<compile_context>
chip_gen: v6e
topology: v6e:2x2x1
jax: 0.10.0
libtpu: 0.0.40
codegen_flags: <defaults>
</compile_context>

<pallas_src>
import jax
import jax.numpy as jnp
from jax.experimental import pallas as pl
from jax.experimental.pallas import tpu as pltpu

# ---- small config consistent with JambaConfig fields ----
HIDDEN = 64                        # config.hidden_size
NUM_HEADS = 4                      # config.num_attention_heads
NUM_KV_HEADS = 2                   # config.num_key_value_heads
HEAD_DIM = HIDDEN // NUM_HEADS     # 16
REP = NUM_HEADS // NUM_KV_HEADS    # 2 (GQA replication factor)
Q_SIZE = NUM_HEADS * HEAD_DIM      # 64
KV_SIZE = NUM_KV_HEADS * HEAD_DIM  # 32
QKV_SIZE = Q_SIZE + 2 * KV_SIZE    # 128 (one dense vreg row)
FFN_INTER = 128                    # config.intermediate_size
SEQ = 16                           # tokens in the (single) prefill sequence
RMS_EPS = 1e-6                     # config.rms_norm_eps
SCALE = HEAD_DIM ** -0.5           # folded into q rows of qkv_w at init
NEG_INF = -1e30


def _rmsnorm(x, w):
    # f32 reduction (VPU) — kept in f32 regardless of MXU dtype.
    var = jnp.mean(x * x, axis=-1, keepdims=True)
    return x * jax.lax.rsqrt(var + RMS_EPS) * w


def _bf(x):
    return x.astype(jnp.bfloat16)


def jamba_attn_layer_kernel(hs_ref, in_ln_ref, qkv_w_ref, o_w_ref,
                            pre_ln_ref, gu_w_ref, down_w_ref, packed_ref):
    L = hs_ref.shape[0]
    hs = hs_ref[...]                                    # (L, H) f32

    # ---- input_layernorm (residual is None path: residual = hidden_states) ----
    residual = hs
    h = _rmsnorm(hs, in_ln_ref[...])                    # (L, H) f32

    # ---- fused qkv_proj: one MXU matmul, 128-lane-dense, bf16 in / f32 acc ----
    qkv = jnp.dot(_bf(h), qkv_w_ref[...],
                  preferred_element_type=jnp.float32)   # (L, QKV_SIZE)

    # ---- grouped-query causal self-attention (prefill, fresh KV cache) ----
    q = qkv[:, :Q_SIZE]
    k = qkv[:, Q_SIZE:Q_SIZE + KV_SIZE]
    v = qkv[:, Q_SIZE + KV_SIZE:]

    # Head-batched layout: the REP query heads sharing a kv-head are stacked
    # along the sublane (M) axis -> (NKV, REP*L, D); k/v stay (NKV, L, D).
    qg = (q.reshape(L, NUM_HEADS, HEAD_DIM)
           .transpose(1, 0, 2)
           .reshape(NUM_KV_HEADS, REP * L, HEAD_DIM))
    kg = k.reshape(L, NUM_KV_HEADS, HEAD_DIM).transpose(1, 0, 2)
    vg = v.reshape(L, NUM_KV_HEADS, HEAD_DIM).transpose(1, 0, 2)

    # One batched MXU push for all scores (SCALE already folded into qkv_w).
    s = jax.lax.dot_general(
        _bf(qg), _bf(kg),
        dimension_numbers=(((2,), (2,)), ((0,), (0,))),
        preferred_element_type=jnp.float32)             # (NKV, REP*L, L)

    # Causal mask: query token index for stacked row m is m % L.
    qpos = jax.lax.broadcasted_iota(jnp.int32, (REP * L, L), 0) % L
    kpos = jax.lax.broadcasted_iota(jnp.int32, (REP * L, L), 1)
    causal = (qpos >= kpos)[None, :, :]
    s = jnp.where(causal, s, NEG_INF)

    # Single batched softmax in f32; divide goes to the EUP via approx recip.
    m = jnp.max(s, axis=-1, keepdims=True)
    e = jnp.exp(s - m)
    denom = jnp.sum(e, axis=-1, keepdims=True)
    p = e * pl.reciprocal(denom, approx=True)           # (NKV, REP*L, L)

    # One batched MXU push for p @ v.
    attn_g = jax.lax.dot_general(
        _bf(p), _bf(vg),
        dimension_numbers=(((2,), (1,)), ((0,), (0,))),
        preferred_element_type=jnp.float32)             # (NKV, REP*L, D)

    attn = (attn_g.reshape(NUM_HEADS, L, HEAD_DIM)
                  .transpose(1, 0, 2)
                  .reshape(L, Q_SIZE))                  # (L, Q_SIZE)

    # ---- o_proj ----
    h2 = jnp.dot(_bf(attn), o_w_ref[...],
                 preferred_element_type=jnp.float32)    # (L, H)

    # ---- pre_ff_layernorm (fused residual add, vLLM RMSNorm semantics) ----
    x = h2 + residual
    h3 = _rmsnorm(x, pre_ln_ref[...])

    # ---- feed_forward: JambaMLP = single-expert FusedMoE (SwiGLU) ----
    gu = jnp.dot(_bf(h3), gu_w_ref[...],
                 preferred_element_type=jnp.float32)    # (L, 2*I_ff)
    gate = gu[:, :FFN_INTER]
    up = gu[:, FFN_INTER:]
    act = gate * jax.nn.sigmoid(gate) * up              # f32 elementwise SiLU
    ffn = jnp.dot(_bf(act), down_w_ref[...],
                  preferred_element_type=jnp.float32)   # (L, H)

    # ---- lane-dense packed store: [ffn_out | residual] -> (L, 128) ----
    packed_ref[...] = jnp.concatenate([ffn, x], axis=-1)


def jamba_attention_decoder_layer(hidden_states, p):
    L = hidden_states.shape[0]
    args = (hidden_states, p['in_ln_w'], p['qkv_w'], p['o_w'],
            p['pre_ff_ln_w'], p['gate_up_w'], p['down_w'])
    packed = pl.pallas_call(
        jamba_attn_layer_kernel,
        out_shape=jax.ShapeDtypeStruct((L, 2 * HIDDEN), jnp.float32),
        in_specs=[pl.BlockSpec(memory_space=pltpu.MemorySpace.VMEM)] * len(args),
        out_specs=pl.BlockSpec(memory_space=pltpu.MemorySpace.VMEM),
        compiler_params=pltpu.CompilerParams(vmem_limit_bytes=32 * 1024 * 1024),
    )(*args)
    # Split the lane-dense packed output in the wrapper (layout plumbing only).
    return packed[:, :HIDDEN], packed[:, HIDDEN:]


def init_params(key):
    ks = jax.random.split(key, 4)

    def rnd(k, shape, scale):
        return (scale * jax.random.normal(k, shape)).astype(jnp.float32)

    # Module-native (out_features, in_features) layouts.
    qkv_w = rnd(ks[0], (QKV_SIZE, HIDDEN), 0.08)       # QKVParallelLinear, no bias
    o_w = rnd(ks[1], (HIDDEN, Q_SIZE), 0.08)           # RowParallelLinear, no bias
    gate_up_w = rnd(ks[2], (2 * FFN_INTER, HIDDEN), 0.08)  # FusedMoE w13 (1 expert)
    down_w = rnd(ks[3], (HIDDEN, FFN_INTER), 0.08)     # FusedMoE w2

    # Fold the attention scaling into the q rows (mathematically identical to
    # multiplying the scores by SCALE afterwards).
    qkv_w = qkv_w.at[:Q_SIZE, :].multiply(SCALE)

    return {
        'in_ln_w': jnp.ones((1, HIDDEN), jnp.float32),
        'pre_ff_ln_w': jnp.ones((1, HIDDEN), jnp.float32),
        # Pre-transpose once on the host to (in_features, out_features) and
        # cast to bf16 so the kernel feeds the MXU directly (no vxpose).
        'qkv_w': qkv_w.T.astype(jnp.bfloat16),
        'o_w': o_w.T.astype(jnp.bfloat16),
        'gate_up_w': gate_up_w.T.astype(jnp.bfloat16),
        'down_w': down_w.T.astype(jnp.bfloat16),
    }


def ref_forward(hs, p):
    """Pure-JAX reference mirroring the PyTorch prefill forward (residual=None),
    with the same bf16 MXU-input casts as the kernel (f32 accumulation and f32
    elementwise math)."""
    f32 = jnp.float32
    bf = lambda a: a.astype(jnp.bfloat16).astype(f32)
    rms = lambda v, w: v * jax.lax.rsqrt(
        jnp.mean(v * v, -1, keepdims=True) + RMS_EPS) * w

    residual = hs
    h = rms(hs, p['in_ln_w'])
    qkv = bf(h) @ p['qkv_w'].astype(f32)
    q = qkv[:, :Q_SIZE].reshape(SEQ, NUM_HEADS, HEAD_DIM)
    k = qkv[:, Q_SIZE:Q_SIZE + KV_SIZE].reshape(SEQ, NUM_KV_HEADS, HEAD_DIM)
    v = qkv[:, Q_SIZE + KV_SIZE:].reshape(SEQ, NUM_KV_HEADS, HEAD_DIM)
    k = jnp.repeat(k, REP, axis=1)
    v = jnp.repeat(v, REP, axis=1)
    s = jnp.einsum('qhd,khd->hqk', bf(q), bf(k))   # SCALE already in qkv_w
    mask = jnp.tril(jnp.ones((SEQ, SEQ), bool))[None]
    s = jnp.where(mask, s, NEG_INF)
    pmax = jnp.max(s, axis=-1, keepdims=True)
    e = jnp.exp(s - pmax)
    probs = e / jnp.sum(e, axis=-1, keepdims=True)
    attn = jnp.einsum('hqk,khd->qhd', bf(probs), bf(v)).reshape(SEQ, Q_SIZE)
    h2 = bf(attn) @ p['o_w'].astype(f32)
    x = h2 + residual
    h3 = rms(x, p['pre_ff_ln_w'])
    gu = bf(h3) @ p['gate_up_w'].astype(f32)
    gate, up = gu[:, :FFN_INTER], gu[:, FFN_INTER:]
    act = gate * jax.nn.sigmoid(gate) * up
    out = bf(act) @ p['down_w'].astype(f32)
    return out, x


if __name__ == "__main__":
    key = jax.random.PRNGKey(0)
    k_in, k_par = jax.random.split(key)
    hidden_states = jax.random.normal(k_in, (SEQ, HIDDEN), dtype=jnp.float32)
    positions = jnp.arange(SEQ, dtype=jnp.int32)  # unused: Jamba attn has no RoPE
    params = init_params(k_par)

    out, resid = jamba_attention_decoder_layer(hidden_states, params)
    jax.block_until_ready((out, resid))

    ref_out, ref_resid = ref_forward(hidden_states, params)
    assert out.shape == (SEQ, HIDDEN) and resid.shape == (SEQ, HIDDEN)
    assert jnp.allclose(out, ref_out, rtol=2e-3, atol=3e-3), "output mismatch"
    assert jnp.allclose(resid, ref_resid, rtol=2e-3, atol=3e-3), "residual mismatch"
    print("KERNEL_OK")
</pallas_src>

<mosaic_0001>
module attributes {stable_mosaic.version = 11 : i64} {
  func.func @jamba_attn_layer_kernel(%arg0: memref<16x64xf32, #tpu.memory_space<vmem>>, %arg1: memref<1x64xf32, #tpu.memory_space<vmem>>, %arg2: memref<64x128xbf16, #tpu.memory_space<vmem>>, %arg3: memref<64x64xbf16, #tpu.memory_space<vmem>>, %arg4: memref<1x64xf32, #tpu.memory_space<vmem>>, %arg5: memref<64x256xbf16, #tpu.memory_space<vmem>>, %arg6: memref<128x64xbf16, #tpu.memory_space<vmem>>, %arg7: memref<16x128xf32, #tpu.memory_space<vmem>>) attributes {dimension_semantics = [], scalar_prefetch = 0 : i64, scratch_operands = 0 : i64, tpu.core_type = #tpu.core_type<tc>} {
    %c0 = arith.constant 0 : index
    %c0_0 = arith.constant 0 : index
    %0 = vector.load %arg0[%c0, %c0_0] : memref<16x64xf32, #tpu.memory_space<vmem>>, vector<16x64xf32>
    %c0_1 = arith.constant 0 : index
    %c0_2 = arith.constant 0 : index
    %1 = vector.load %arg1[%c0_1, %c0_2] : memref<1x64xf32, #tpu.memory_space<vmem>>, vector<1x64xf32>
    %2 = arith.mulf %0, %0 : vector<16x64xf32>
    %cst = arith.constant dense<0.000000e+00> : vector<16xf32>
    %3 = vector.multi_reduction <add>, %2, %cst [1] : vector<16x64xf32> to vector<16xf32>
    %4 = vector.shape_cast %3 : vector<16xf32> to vector<16x1xf32>
    %cst_3 = arith.constant 6.400000e+01 : f32
    %5 = vector.broadcast %cst_3 : f32 to vector<16x1xf32>
    %6 = arith.divf %4, %5 : vector<16x1xf32>
    %cst_4 = arith.constant 9.99999997E-7 : f32
    %7 = vector.broadcast %cst_4 : f32 to vector<16x1xf32>
    %8 = arith.addf %6, %7 : vector<16x1xf32>
    %9 = math.rsqrt %8 : vector<16x1xf32>
    %10 = vector.broadcast %9 : vector<16x1xf32> to vector<16x64xf32>
    %11 = arith.mulf %0, %10 : vector<16x64xf32>
    %12 = vector.broadcast %1 : vector<1x64xf32> to vector<16x64xf32>
    %13 = arith.mulf %11, %12 : vector<16x64xf32>
    %14 = arith.truncf %13 : vector<16x64xf32> to vector<16x64xbf16>
    %c0_5 = arith.constant 0 : index
    %c0_6 = arith.constant 0 : index
    %15 = vector.load %arg2[%c0_5, %c0_6] : memref<64x128xbf16, #tpu.memory_space<vmem>>, vector<64x128xbf16>
    %cst_7 = arith.constant dense<0.000000e+00> : vector<16x128xf32>
    %16 = tpu.matmul %14, %15, %cst_7 {dimension_numbers = #tpu.dot_dimension_numbers<[1], [0], [0], [1], [0, 0, 1, 1], [], []>} : vector<16x64xbf16>, vector<64x128xbf16>, vector<16x128xf32> -> vector<16x128xf32>
    %17 = vector.extract_strided_slice %16 {offsets = [0, 0], sizes = [16, 64], strides = [1, 1]} : vector<16x128xf32> to vector<16x64xf32>
    %18 = vector.extract_strided_slice %16 {offsets = [0, 64], sizes = [16, 32], strides = [1, 1]} : vector<16x128xf32> to vector<16x32xf32>
    %19 = vector.extract_strided_slice %16 {offsets = [0, 96], sizes = [16, 32], strides = [1, 1]} : vector<16x128xf32> to vector<16x32xf32>
    %20 = vector.shape_cast %17 : vector<16x64xf32> to vector<16x4x16xf32>
    %21 = tpu.transpose %20, [1, 0, 2] : vector<16x4x16xf32> -> vector<4x16x16xf32>
    %22 = vector.shape_cast %21 : vector<4x16x16xf32> to vector<2x32x16xf32>
    %23 = vector.shape_cast %18 : vector<16x32xf32> to vector<16x2x16xf32>
    %24 = tpu.transpose %23, [1, 0, 2] : vector<16x2x16xf32> -> vector<2x16x16xf32>
    %25 = vector.shape_cast %19 : vector<16x32xf32> to vector<16x2x16xf32>
    %26 = tpu.transpose %25, [1, 0, 2] : vector<16x2x16xf32> -> vector<2x16x16xf32>
    %27 = arith.truncf %22 : vector<2x32x16xf32> to vector<2x32x16xbf16>
    %28 = arith.truncf %24 : vector<2x16x16xf32> to vector<2x16x16xbf16>
    %cst_8 = arith.constant dense<0.000000e+00> : vector<2x32x16xf32>
    %29 = tpu.matmul %27, %28, %cst_8 {dimension_numbers = #tpu.dot_dimension_numbers<[2], [2], [1], [1], [0, 0, 0, 1, 1, 1], [0], [0]>} : vector<2x32x16xbf16>, vector<2x16x16xbf16>, vector<2x32x16xf32> -> vector<2x32x16xf32>
    %30 = tpu.iota {dimensions = array<i32: 0>} : vector<32x16xi32>
    %c16_i32 = arith.constant 16 : i32
    %c0_i32 = arith.constant 0 : i32
    %31 = arith.cmpi eq, %c16_i32, %c0_i32 : i32
    %c1_i32 = arith.constant 1 : i32
    %32 = arith.select %31, %c1_i32, %c16_i32 : i32
    %33 = vector.broadcast %32 : i32 to vector<32x16xi32>
    %34 = arith.remsi %30, %33 : vector<32x16xi32>
    %c0_i32_9 = arith.constant 0 : i32
    %35 = vector.broadcast %c0_i32_9 : i32 to vector<32x16xi32>
    %36 = arith.cmpi ne, %34, %35 : vector<32x16xi32>
    %c0_i32_10 = arith.constant 0 : i32
    %37 = vector.broadcast %c0_i32_10 : i32 to vector<32x16xi32>
    %38 = arith.cmpi slt, %34, %37 : vector<32x16xi32>
    %c0_i32_11 = arith.constant 0 : i32
    %39 = arith.cmpi slt, %32, %c0_i32_11 : i32
    %40 = vector.broadcast %39 : i1 to vector<32x16xi1>
    %41 = vector.broadcast %40 : vector<32x16xi1> to vector<32x16xi1>
    %42 = arith.xori %38, %41 : vector<32x16xi1>
    %43 = arith.andi %42, %36 : vector<32x16xi1>
    %44 = vector.broadcast %32 : i32 to vector<32x16xi32>
    %45 = arith.addi %34, %44 : vector<32x16xi32>
    %46 = arith.select %43, %45, %34 : vector<32x16xi1>, vector<32x16xi32>
    %47 = tpu.iota {dimensions = array<i32: 1>} : vector<32x16xi32>
    %48 = arith.cmpi sge, %46, %47 : vector<32x16xi32>
    %49 = vector.shape_cast %48 : vector<32x16xi1> to vector<1x32x16xi1>
    %cst_12 = arith.constant -1.000000e+30 : f32
    %50 = vector.shape_cast %49 : vector<1x32x16xi1> to vector<1x32x16xi1>
    %51 = vector.broadcast %50 : vector<1x32x16xi1> to vector<2x32x16xi1>
    %52 = vector.broadcast %cst_12 : f32 to vector<2x32x16xf32>
    %53 = arith.select %51, %29, %52 : vector<2x32x16xi1>, vector<2x32x16xf32>
    %cst_13 = arith.constant dense<0xFF800000> : vector<2x32xf32>
    %54 = vector.multi_reduction <maximumf>, %53, %cst_13 [2] : vector<2x32x16xf32> to vector<2x32xf32>
    %55 = vector.shape_cast %54 : vector<2x32xf32> to vector<2x32x1xf32>
    %56 = vector.broadcast %55 : vector<2x32x1xf32> to vector<2x32x16xf32>
    %57 = arith.subf %53, %56 : vector<2x32x16xf32>
    %58 = math.exp %57 : vector<2x32x16xf32>
    %cst_14 = arith.constant dense<0.000000e+00> : vector<2x32xf32>
    %59 = vector.multi_reduction <add>, %58, %cst_14 [2] : vector<2x32x16xf32> to vector<2x32xf32>
    %60 = vector.shape_cast %59 : vector<2x32xf32> to vector<2x32x1xf32>
    %61 = tpu.reciprocal %60 {approx = true} : vector<2x32x1xf32> -> vector<2x32x1xf32>
    %62 = vector.broadcast %61 : vector<2x32x1xf32> to vector<2x32x16xf32>
    %63 = arith.mulf %58, %62 : vector<2x32x16xf32>
    %64 = arith.truncf %63 : vector<2x32x16xf32> to vector<2x32x16xbf16>
    %65 = arith.truncf %26 : vector<2x16x16xf32> to vector<2x16x16xbf16>
    %cst_15 = arith.constant dense<0.000000e+00> : vector<2x32x16xf32>
    %66 = tpu.matmul %64, %65, %cst_15 {dimension_numbers = #tpu.dot_dimension_numbers<[2], [1], [1], [2], [0, 0, 0, 1, 1, 2], [0], [0]>} : vector<2x32x16xbf16>, vector<2x16x16xbf16>, vector<2x32x16xf32> -> vector<2x32x16xf32>
    %67 = vector.shape_cast %66 : vector<2x32x16xf32> to vector<4x16x16xf32>
    %68 = tpu.transpose %67, [1, 0, 2] : vector<4x16x16xf32> -> vector<16x4x16xf32>
    %69 = vector.shape_cast %68 : vector<16x4x16xf32> to vector<16x64xf32>
    %70 = arith.truncf %69 : vector<16x64xf32> to vector<16x64xbf16>
    %c0_16 = arith.constant 0 : index
    %c0_17 = arith.constant 0 : index
    %71 = vector.load %arg3[%c0_16, %c0_17] : memref<64x64xbf16, #tpu.memory_space<vmem>>, vector<64x64xbf16>
    %cst_18 = arith.constant dense<0.000000e+00> : vector<16x64xf32>
    %72 = tpu.matmul %70, %71, %cst_18 {dimension_numbers = #tpu.dot_dimension_numbers<[1], [0], [0], [1], [0, 0, 1, 1], [], []>} : vector<16x64xbf16>, vector<64x64xbf16>, vector<16x64xf32> -> vector<16x64xf32>
    %73 = arith.addf %72, %0 : vector<16x64xf32>
    %c0_19 = arith.constant 0 : index
    %c0_20 = arith.constant 0 : index
    %74 = vector.load %arg4[%c0_19, %c0_20] : memref<1x64xf32, #tpu.memory_space<vmem>>, vector<1x64xf32>
    %75 = arith.mulf %73, %73 : vector<16x64xf32>
    %cst_21 = arith.constant dense<0.000000e+00> : vector<16xf32>
    %76 = vector.multi_reduction <add>, %75, %cst_21 [1] : vector<16x64xf32> to vector<16xf32>
    %77 = vector.shape_cast %76 : vector<16xf32> to vector<16x1xf32>
    %cst_22 = arith.constant 6.400000e+01 : f32
    %78 = vector.broadcast %cst_22 : f32 to vector<16x1xf32>
    %79 = arith.divf %77, %78 : vector<16x1xf32>
    %cst_23 = arith.constant 9.99999997E-7 : f32
    %80 = vector.broadcast %cst_23 : f32 to vector<16x1xf32>
    %81 = arith.addf %79, %80 : vector<16x1xf32>
    %82 = math.rsqrt %81 : vector<16x1xf32>
    %83 = vector.broadcast %82 : vector<16x1xf32> to vector<16x64xf32>
    %84 = arith.mulf %73, %83 : vector<16x64xf32>
    %85 = vector.broadcast %74 : vector<1x64xf32> to vector<16x64xf32>
    %86 = arith.mulf %84, %85 : vector<16x64xf32>
    %87 = arith.truncf %86 : vector<16x64xf32> to vector<16x64xbf16>
    %c0_24 = arith.constant 0 : index
    %c0_25 = arith.constant 0 : index
    %88 = vector.load %arg5[%c0_24, %c0_25] : memref<64x256xbf16, #tpu.memory_space<vmem>>, vector<64x256xbf16>
    %cst_26 = arith.constant dense<0.000000e+00> : vector<16x256xf32>
    %89 = tpu.matmul %87, %88, %cst_26 {dimension_numbers = #tpu.dot_dimension_numbers<[1], [0], [0], [1], [0, 0, 1, 1], [], []>} : vector<16x64xbf16>, vector<64x256xbf16>, vector<16x256xf32> -> vector<16x256xf32>
    %90 = vector.extract_strided_slice %89 {offsets = [0, 0], sizes = [16, 128], strides = [1, 1]} : vector<16x256xf32> to vector<16x128xf32>
    %91 = vector.extract_strided_slice %89 {offsets = [0, 128], sizes = [16, 128], strides = [1, 1]} : vector<16x256xf32> to vector<16x128xf32>
    %92 = arith.negf %90 : vector<16x128xf32>
    %93 = math.exp %92 : vector<16x128xf32>
    %cst_27 = arith.constant 1.000000e+00 : f32
    %94 = vector.broadcast %cst_27 : f32 to vector<16x128xf32>
    %95 = arith.addf %94, %93 : vector<16x128xf32>
    %96 = arith.divf %94, %95 : vector<16x128xf32>
    %97 = arith.mulf %90, %96 : vector<16x128xf32>
    %98 = arith.mulf %97, %91 : vector<16x128xf32>
    %99 = arith.truncf %98 : vector<16x128xf32> to vector<16x128xbf16>
    %c0_28 = arith.constant 0 : index
    %c0_29 = arith.constant 0 : index
    %100 = vector.load %arg6[%c0_28, %c0_29] : memref<128x64xbf16, #tpu.memory_space<vmem>>, vector<128x64xbf16>
    %cst_30 = arith.constant dense<0.000000e+00> : vector<16x64xf32>
    %101 = tpu.matmul %99, %100, %cst_30 {dimension_numbers = #tpu.dot_dimension_numbers<[1], [0], [0], [1], [0, 0, 1, 1], [], []>} : vector<16x128xbf16>, vector<128x64xbf16>, vector<16x64xf32> -> vector<16x64xf32>
    %102 = tpu.concatenate %101, %73 in 1 : vector<16x64xf32>, vector<16x64xf32> -> vector<16x128xf32>
    %c0_31 = arith.constant 0 : index
    %c0_32 = arith.constant 0 : index
    %103 = vector.load %arg7[%c0_31, %c0_32] : memref<16x128xf32, #tpu.memory_space<vmem>>, vector<16x128xf32>
    tpu.vector_store %arg7[%c0_31, %c0_32], %102 {strides = array<i32>} : memref<16x128xf32, #tpu.memory_space<vmem>>, vector<16x128xf32>,
    return
  }
}

</mosaic_0001>

<bundles_post_ra>
// kernel: tpu_custom_call.1
= control target key start
LH: loop header
LB: loop body
LE: loop exit
PB: predicated region body
PF: predicated region fallthrough
CT: control target
= control target key end

     0   :  { %12 = vsyncpa [#allocation3], 0  ;;  %s2785_s0 = inlined_call_operand.hbm [shape: f32[16,64], index: 0, kind: input, shape index: {}]   ;;  %s2786_s1 = inlined_call_operand.vmem [shape: f32[1,64], index: 1, kind: input, shape index: {}]   ;;  %s2787_s2 = inlined_call_operand.vmem [shape: bf16[64,128], index: 2, kind: input, shape index: {}]   ;;  %s2788_s3 = inlined_call_operand.hbm [shape: bf16[64,64], index: 3, kind: input, shape index: {}]   ;;  %s2789_s4 = inlined_call_operand.vmem [shape: f32[1,64], index: 4, kind: input, shape index: {}]   ;;  %s2790_s5 = inlined_call_operand.vmem [shape: bf16[64,256], index: 5, kind: input, shape index: {}]   ;;  %s2791_s6 = inlined_call_operand.vmem [shape: bf16[128,64], index: 6, kind: input, shape index: {}]   ;;  %s2792_s7 = inlined_call_operand.hbm [shape: f32[16,128], index: 7, kind: output, shape index: {}]  }
   0x1   :  { %13 = vsyncpa [#allocation6], 0 }
   0x2   :  { %14 = vsyncpa [#allocation4], 0  ;;  %s2330_s24 = smov [#allocation2]  }
   0x3   :  { %s20_s25 = sshll.u32 %s2330_s24, 4  ;;  %s21_s25 = int_to_ptr.vmem [resolvable:$true] %s20_s25 }
   0x4   :  { %s2272_s26 = scalar_lea.vmem %s21_s25, 256  ;;  %p2277_p1 = scmp.lt.s32.totalorder %s21_s25, %s21_s25 }
   0x5   :  { %p2273_p0 = scmp.ne.s32.totalorder %s21_s25, %s2272_s26  ;;  %p2278_p2 = scmp.lt.s32.totalorder %s2272_s26, %s2272_s26 }
   0x7   :  { %p2279_p3 = por %p2278_p2, %p2277_p1 }
   0x9   :  { %p2280_p4 = pnand %p2279_p3, %p2273_p0 }
   0xb   :  { %2283 = shalt.err (!%p2280_p4)
}
   0xc   :  { %s2331_s27 = smov 128   ;;  %s2332_s28 = smov 8  }
   0xd   :  { %26 = dma.hbm_to_vmem [thread:$0]  %s2785_s0, 256, %s21_s25, [#allocation3], %s2331_s27, %s2331_s27, %s2332_s28  }
   0xe   :  { %s2333_s8 = smov [#allocation5]  }
   0xf   :  { %s36_s9 = sshll.u32 %s2333_s8, 4  ;;  %s37_s9 = int_to_ptr.vmem [resolvable:$true] %s36_s9 }
  0x10   :  { %s2292_s10 = scalar_lea.vmem %s37_s9, 512  ;;  %p2297_p6 = scmp.lt.s32.totalorder %s37_s9, %s37_s9 }
  0x11   :  { %p2293_p5 = scmp.ne.s32.totalorder %s37_s9, %s2292_s10  ;;  %p2298_p7 = scmp.lt.s32.totalorder %s2292_s10, %s2292_s10 }
  0x13   :  { %p2299_p8 = por %p2298_p7, %p2297_p6 }
  0x15   :  { %p2300_p9 = pnand %p2299_p8, %p2293_p5 }
  0x17   :  { %2303 = shalt.err (!%p2300_p9)
}
  0x18   :  { %s2334_s11 = smov 64   ;;  %s2335_s12 = smov 4  }
  0x19   :  { %42 = dma.hbm_to_vmem [thread:$0]  %s2788_s3, 512, %s37_s9, [#allocation6], %s2334_s11, %s2334_s11, %s2335_s12  }
  0x1a   :  { %2324 = dma.done.wait [#allocation3], 256  }
  0x1b   :  { %2325 = vsyncadd [#allocation3], 4294967040 }
  0x1c   :  { %2326 = dma.done.wait [#allocation6], 512  }
  0x1d   :  { %2327 = vsyncadd [#allocation6], 4294966784  ;;  %v56_v0 = vld [vmem:[#allocation2] sm:$0xff]  ;;  %vm61_vm0 = vcmask 523264   ;;  %v57_v1 = vld [vmem:[#allocation2 + $0x8] sm:$0xff]  ;;  %v2336_v7 = vmov 0.0   ;;  %v187_v33 = vlaneseq }
  0x1e   :  { %v59_v2 = vmul.f32 %v56_v0, %v56_v0  ;;  %v60_v3 = vmul.f32 %v57_v1, %v57_v1  ;;  %v2186_v6 = vld [vmem:[%s2787_s2 + $0x18] sm:$0xff]   ;;  %2083 = vmatprep.subr.bf16.mxu1 %v2336_v7  ;;  %vm2337_vm1 = vmmov 0   ;;  %v2187_v8 = vld [vmem:[%s2787_s2 + $0x10] sm:$0xff]   ;;  %v2188_v9 = vld [vmem:[%s2787_s2 + $0x8] sm:$0xff]   ;;  %s2339_s23 = smov 80   ;;  %vm948_vm2 = vcmask 130048  }
  0x1f   :  { %2091 = vmatprep.mubr.msk.bf16.mxu1 %vm2337_vm1, %v2336_v7  ;;  %2084 = vmatpush3.bf16.msra.mxu1 %v2186_v6  ;;  %v2189_v10 = vld [vmem:[%s2787_s2] sm:$0xff]   ;;  %s2338_s2 = smov 112   ;;  %v2341_v31 = vmov 1983009808   ;;  %v2446_v37 = vshrl.u32 %v187_v33, 7  ;;  %s2343_s24 = smov 32  }
  0x20   :  { %v62_v4 = vsel %vm61_vm0, %v59_v2, 0.0  ;;  %v65_v5 = vsel %vm61_vm0, %v60_v3, 0.0  ;;  %2085 = vmatprep.subr.bf16.mxu1 %v2336_v7  ;;  %v1997_v20 = vld [vmem:[%s2786_s1] ss:$0 sm:$0xff]  ;;  %s2340_s1 = smov 96   ;;  %v185_v32 = vunpack.c.l.s4 %v2341_v31  ;;  %s2344_s25 = smov 16  }
  0x21   :  { %63 = vadd.xlane.f32.xlu0 %v62_v4  ;;  %v2342_v38 = vmov 1934713408   ;;  %s2345_s26 = smov 48   ;;  %vm1642_vm7 = vcmask 261120   ;;  %vm1645_vm8 = vcmask 392192  }
  0x22   :  { %v186_v36 = vunpack.c.0.s8 %v185_v32  ;;  %v217_v39 = vunpack.c.l.s4 %v2342_v38 }
  0x23   :  { %2086 = vmatpush3.bf16.msra.mxu1 %v2187_v8 }
  0x24   :  { %2087 = vmatprep.subr.bf16.mxu1 %v2336_v7  ;;  %v2449_v41 = vsub.s32 %v186_v36, %v2446_v37  ;;  %v218_v43 = vunpack.c.0.s8 %v217_v39 }
  0x25   :  { %66 = vadd.xlane.f32.xlu0 %v65_v5 }
  0x26   :  { %v2456_v49 = vsub.s32 %v218_v43, %v2446_v37 }
  0x27   :  { %2088 = vmatpush3.bf16.msra.mxu1 %v2188_v9 }
  0x28   :  { %2089 = vmatprep.subr.bf16.mxu1 %v2336_v7 }
  0x2b   :  { %2090 = vmatpush3.bf16.msra.mxu1 %v2189_v10 }
  0xaa   :  { %v64_v11 = vpop.xlane.xlu0 %63 }
  0xab   :  { %v69_v12 = vmul.f32 0.015625, %v64_v11 }
  0xad   :  { %v71_v13 = vadd.f32 1e-06, %v69_v12 }
  0xae   :  { %v67_v14 = vpop.xlane.xlu0 %66 }
  0xaf   :  { %2214 = vrsqrt.f32 %v71_v13  ;;  %v70_v15 = vmul.f32 0.015625, %v67_v14 }
  0xb1   :  { %v72_v16 = vadd.f32 1e-06, %v70_v15 }
  0xb3   :  { %2216 = vrsqrt.f32 %v72_v16 }
  0xbc   :  { %v2215_v17 = vpop.eup %2214 }
  0xbd   :  { %v75_v18 = vmul.f32 %v2215_v17, %v56_v0 }
  0xbf   :  { %v83_v22 = vmul.f32 %v1997_v20, %v75_v18 }
  0xc0   :  { %v2217_v19 = vpop.eup %2216 }
  0xc1   :  { %v76_v21 = vmul.f32 %v2217_v19, %v57_v1 }
  0xc3   :  { %v84_v23 = vmul.f32 %v1997_v20, %v76_v21 }
  0xc5   :  { %v85_v24 = vpack.c.bf16 %v84_v23, %v83_v22 }
  0xc7   :  { %2092 = vmatmul.mubr.msk.bf16.vlgmr.msra.gmra.mxu1 %vm61_vm0, %v85_v24 }
 0x187   :  { %v2423_v25 = vpop.f32.mrf.mxu1 }
 0x188   :  { %454 = vrot.lane.b32.xlu0 %v2423_v25, %s2334_s11  ;;  %164 = vrot.lane.b32.xlu1 %v2423_v25, %s2338_s2 }
 0x189   :  { %v2093_v26 = vpop.f32.mrf.mxu1 }
 0x18b   :  { %v2428_v27 = vpop.f32.mrf.mxu1 }
 0x18c   :  { %178 = vrot.lane.b32.xlu0 %v2428_v27, %s2339_s23  ;;  %166 = vrot.lane.b32.xlu1 %v2428_v27, %s2338_s2 }
 0x18d   :  { %v2094_v28 = vpop.f32.mrf.mxu1 }
 0x190   :  { %170 = vrot.lane.b32.xlu1 %v2423_v25, %s2340_s1 }
 0x194   :  { %456 = vrot.lane.b32.xlu1 %v2428_v27, %s2334_s11 }
 0x1fa   :  { %v2435_v29 = vpop.permute.xlu1 %164  ;;  %v455_v35 = vpop.permute.xlu0 %454 }
 0x1fb   :  { %458 = vrot.lane.b32.xlu1 %v2435_v29, %s2334_s11  ;;  %v466_v44 = vcombine.high %v455_v35, %v2336_v7  ;;  %v473_v48 = vrot.slane %v455_v35, %v2449_v41 }
 0x1fd   :  { %v480_v53 = vrot.slane %v466_v44, %v2449_v41 }
 0x1fe   :  { %v2439_v30 = vpop.permute.xlu1 %166  ;;  %v179_v42 = vpop.permute.xlu0 %178 }
 0x1ff   :  { %460 = vrot.lane.b32.xlu1 %v2439_v30, %s2334_s11  ;;  %v266_v45 = vcombine.low %v2439_v30, %v179_v42  ;;  %v267_v46 = vcombine.high %v2439_v30, %v179_v42 }
 0x201   :  { %v274_v60 = vrot.slane %v266_v45, %v2449_v41  ;;  %v281_v61 = vrot.slane %v267_v46, %v2449_v41 }
 0x202   :  { %v171_v34 = vpop.permute.xlu1 %170 }
 0x203   :  { %172 = vrot.lane.b32.xlu1 %v2428_v27, %s2340_s1  ;;  %v182_v52 = vcombine.low %v2423_v25, %v171_v34  ;;  %v183_v57 = vcombine.high %v2423_v25, %v171_v34 }
 0x205   :  { %v190_v2 = vrot.slane %v182_v52, %v2449_v41  ;;  %v197_v24 = vrot.slane %v183_v57, %v2449_v41 }
 0x206   :  { %v457_v40 = vpop.permute.xlu1 %456 }
 0x207   :  { %176 = vrot.lane.b32.xlu1 %v2423_v25, %s2339_s23  ;;  %v532_v58 = vcombine.high %v457_v40, %v2336_v7  ;;  %v539_v3 = vrot.slane %v457_v40, %v2449_v41 }
 0x209   :  { %v546_v11 = vrot.slane %v532_v58, %v2449_v41 }
 0x26d   :  { %v459_v47 = vpop.permute.xlu1 %458 }
 0x26e   :  { %v481_v50 = vcombine.high %v459_v47, %v2336_v7  ;;  %v488_v51 = vrot.slane %v459_v47, %v2449_v41 }
 0x270   :  { %v495_v54 = vrot.slane %v481_v50, %v2449_v41  ;;  %v496_v55 = vcombine.low %v473_v48, %v488_v51  ;;  %v497_v56 = vcombine.high %v473_v48, %v488_v51 }
 0x271   :  { %v461_v59 = vpop.permute.xlu1 %460 }
 0x272   :  { %v504_v62 = vrot.slane %v496_v55, %v2456_v49  ;;  %v511_v63 = vrot.slane %v497_v56, %v2456_v49  ;;  %v512_v0 = vcombine.low %v480_v53, %v495_v54  ;;  %v513_v1 = vcombine.high %v480_v53, %v495_v54 }
 0x273   :  { %v547_v4 = vcombine.high %v461_v59, %v2336_v7  ;;  %v554_v5 = vrot.slane %v461_v59, %v2449_v41 }
 0x274   :  { %v520_v6 = vrot.slane %v512_v0, %v2456_v49  ;;  %v527_v8 = vrot.slane %v513_v1, %v2456_v49  ;;  %v598_v9 = vcombine.low %v504_v62, %v511_v63  ;;  %v2007_v10 = vcombine.high %v504_v62, %v511_v63 }
 0x275   :  { %v561_v12 = vrot.slane %v547_v4, %v2449_v41  ;;  %v562_v13 = vcombine.low %v539_v3, %v554_v5  ;;  %v563_v14 = vcombine.high %v539_v3, %v554_v5  ;;  %v173_v15 = vpop.permute.xlu1 %172 }
 0x276   :  { %v2478_v16 = vrot.slane %v598_v9, %v2449_v41  ;;  %v2481_v17 = vrot.slane %v2007_v10, %v2449_v41  ;;  %v614_v18 = vcombine.low %v520_v6, %v527_v8  ;;  %v2008_v19 = vcombine.high %v520_v6, %v527_v8 }
 0x277   :  { %v570_v20 = vrot.slane %v562_v13, %v2456_v49  ;;  %v577_v21 = vrot.slane %v563_v14, %v2456_v49  ;;  %v578_v22 = vcombine.low %v546_v11, %v561_v12  ;;  %v579_v23 = vcombine.high %v546_v11, %v561_v12 }
 0x278   :  { %v621_v26 = vrot.slane %v614_v18, %v2449_v41  ;;  %v629_v28 = vrot.slane %v2008_v19, %v2449_v41  ;;  %v250_v31 = vcombine.low %v2428_v27, %v173_v15  ;;  %v251_v39 = vcombine.high %v2428_v27, %v173_v15 }
 0x279   :  { %v586_v32 = vrot.slane %v578_v22, %v2456_v49  ;;  %v593_v34 = vrot.slane %v579_v23, %v2456_v49  ;;  %v648_v35 = vcombine.low %v570_v20, %v577_v21  ;;  %v2009_v36 = vcombine.high %v570_v20, %v577_v21  ;;  %v177_v38 = vpop.permute.xlu1 %176 }
 0x27a   :  { %v258_v40 = vrot.slane %v250_v31, %v2449_v41  ;;  %v198_v42 = vcombine.low %v2435_v29, %v177_v38  ;;  %v199_v43 = vcombine.high %v2435_v29, %v177_v38  ;;  %v630_v44 = vcombine.low %v2478_v16, %v2481_v17 }
 0x27b   :  { %v655_v45 = vrot.slane %v648_v35, %v2449_v41  ;;  %v664_v46 = vcombine.low %v586_v32, %v593_v34  ;;  %v2010_v47 = vcombine.high %v586_v32, %v593_v34  ;;  %v265_v48 = vrot.slane %v251_v39, %v2449_v41 }
 0x27c   :  { %v282_v50 = vcombine.low %v258_v40, %v274_v60  ;;  %v283_v51 = vcombine.high %v258_v40, %v274_v60  ;;  %v206_v52 = vrot.slane %v198_v42, %v2449_v41  ;;  %v663_v53 = vrot.slane %v2009_v36, %v2449_v41 }
 0x27d   :  { %v671_v54 = vrot.slane %v664_v46, %v2449_v41  ;;  %v679_v55 = vrot.slane %v2010_v47, %v2449_v41  ;;  %v213_v56 = vrot.slane %v199_v43, %v2449_v41  ;;  %v298_v59 = vcombine.low %v265_v48, %v281_v61 }
 0x27e   :  { %v290_v57 = vrot.slane %v282_v50, %v2456_v49  ;;  %v297_v58 = vrot.slane %v283_v51, %v2456_v49  ;;  %v299_v62 = vcombine.high %v265_v48, %v281_v61  ;;  %v214_v63 = vcombine.low %v190_v2, %v206_v52 }
 0x27f   :  { %v215_v0 = vcombine.high %v190_v2, %v206_v52  ;;  %v230_v1 = vcombine.low %v197_v24, %v213_v56  ;;  %v231_v60 = vcombine.high %v197_v24, %v213_v56  ;;  %v306_v3 = vrot.slane %v298_v59, %v2456_v49 }
 0x280   :  { %v313_v4 = vrot.slane %v299_v62, %v2456_v49  ;;  %v386_v5 = vcombine.low %v290_v57, %v297_v58  ;;  %v2005_v6 = vcombine.high %v290_v57, %v297_v58  ;;  %v222_v8 = vrot.slane %v214_v63, %v2456_v49 }
 0x281   :  { %v229_v9 = vrot.slane %v215_v0, %v2456_v49  ;;  %v238_v10 = vrot.slane %v230_v1, %v2456_v49  ;;  %v245_v11 = vrot.slane %v231_v60, %v2456_v49  ;;  %v680_v18 = vcombine.low %v655_v45, %v663_v53 }
 0x282   :  { %v393_v61 = vrot.slane %v386_v5, %v2449_v41  ;;  %v401_v2 = vrot.slane %v2005_v6, %v2449_v41  ;;  %v402_v12 = vcombine.low %v306_v3, %v313_v4  ;;  %v2006_v13 = vcombine.high %v306_v3, %v313_v4 }
 0x283   :  { %v318_v14 = vcombine.low %v222_v8, %v229_v9  ;;  %v2003_v15 = vcombine.high %v222_v8, %v229_v9  ;;  %v334_v16 = vcombine.low %v238_v10, %v245_v11  ;;  %v2004_v17 = vcombine.high %v238_v10, %v245_v11 }
 0x284   :  { %v409_v19 = vrot.slane %v402_v12, %v2449_v41  ;;  %v417_v20 = vrot.slane %v2006_v13, %v2449_v41  ;;  %v638_v21 = vcombine.low %v621_v26, %v629_v28  ;;  %v688_v34 = vcombine.low %v671_v54, %v679_v55 }
 0x285   :  { %v325_v22 = vrot.slane %v318_v14, %v2449_v41  ;;  %v333_v23 = vrot.slane %v2003_v15, %v2449_v41  ;;  %v341_v24 = vrot.slane %v334_v16, %v2449_v41  ;;  %v349_v31 = vrot.slane %v2004_v17, %v2449_v41 }
 0x286   :  { %v645_v32 = vrot.slane %v638_v21, %v2456_v49  ;;  %v418_v35 = vcombine.low %v393_v61, %v401_v2  ;;  %v434_v39 = vcombine.low %v409_v19, %v417_v20  ;;  %v637_v40 = vrot.slane %v630_v44, %v2456_v49 }
 0x287   :  { %v350_v36 = vcombine.low %v325_v22, %v333_v23  ;;  %v366_v38 = vcombine.low %v341_v24, %v349_v31  ;;  %v687_v42 = vrot.slane %v680_v18, %v2456_v49  ;;  %v695_v26 = vrot.slane %v688_v34, %v2456_v49 }
 0x288   :  { %v426_v28 = vrot.slane %v418_v35, %v2456_v49  ;;  %v442_v46 = vrot.slane %v434_v39, %v2456_v49  ;;  %v351_v47 = vcombine.high %v325_v22, %v333_v23  ;;  %v646_v48 = vcombine.low %v637_v40, %v645_v32 }
 0x289   :  { %v358_v43 = vrot.slane %v350_v36, %v2456_v49  ;;  %v374_v45 = vrot.slane %v366_v38, %v2456_v49  ;;  %v696_v50 = vcombine.low %v687_v42, %v695_v26  ;;  %v697_v51 = vcombine.high %v687_v42, %v695_v26 }
 0x28a   :  { %v367_v52 = vcombine.high %v341_v24, %v349_v31  ;;  %v450_v44 = vcombine.low %v426_v28, %v442_v46  ;;  %v419_v54 = vcombine.high %v393_v61, %v401_v2  ;;  %v647_v56 = vcombine.high %v637_v40, %v645_v32 }
 0x28b   :  { %v382_v53 = vcombine.low %v358_v43, %v374_v45  ;;  %v946_v55 = vpack.c.bf16 %v696_v50, %v646_v48  ;;  %v365_v58 = vrot.slane %v351_v47, %v2456_v49  ;;  %v435_v62 = vcombine.high %v409_v19, %v417_v20 }
 0x28c   :  { %v381_v59 = vrot.slane %v367_v52, %v2456_v49  ;;  %v947_v0 = vpack.c.bf16 %v697_v51, %v647_v56  ;;  %v383_v1 = vcombine.high %v358_v43, %v374_v45  ;;  %v433_v60 = vrot.slane %v419_v54, %v2456_v49 }
 0x28d   :  { %v942_v57 = vpack.c.bf16 %v450_v44, %v382_v53  ;;  %2151 = vmatprep.subr.msk.bf16.mxu1 %vm948_vm2, %v946_v55  ;;  %v956_v63 = vsel %vm948_vm2, %v946_v55, 0  ;;  %v449_v3 = vrot.slane %v435_v62, %v2456_v49  ;;  %v451_v4 = vcombine.high %v426_v28, %v442_v46 }
 0x28e   :  { %2096 = vmatpush3.bf16.xpose.msra.mxu1 %v956_v63  ;;  %v384_v5 = vcombine.low %v365_v58, %v381_v59  ;;  %v1014_v10 = vsel %vm948_vm2, %v947_v0, 0  ;;  %v385_v11 = vcombine.high %v365_v58, %v381_v59  ;;  %v1068_v12 = vadd.s32 16, %v2446_v37 }
 0x28f   :  { %2097 = vmatprep.mubr.msk.bf16.mxu1 %vm948_vm2, %v942_v57  ;;  %2152 = vmatprep.subr.msk.bf16.mxu1 %vm948_vm2, %v947_v0  ;;  %v943_v6 = vpack.c.bf16 %v451_v4, %v383_v1  ;;  %v452_v8 = vcombine.low %v433_v60, %v449_v3  ;;  %v453_v61 = vcombine.high %v433_v60, %v449_v3  ;;  %v1119_v14 = vand.u32 127, %v187_v33 }
 0x290   :  { %v1088_v13 = vand.u32 15, %v1068_v12  ;;  %v1069_v15 = vadd.s32 24, %v2446_v37  ;;  %v1074_v16 = vand.u32 15, %v2446_v37  ;;  %v1067_v17 = vadd.s32 8, %v2446_v37 }
 0x291   :  { %v944_v9 = vpack.c.bf16 %v452_v8, %v384_v5  ;;  %v945_v2 = vpack.c.bf16 %v453_v61, %v385_v11 }
 0x292   :  { %vm2545_vm3 = vcmp.ge.s32.totalorder %v1088_v13, %v1119_v14  ;;  %v1095_v19 = vand.u32 15, %v1069_v15  ;;  %vm2549_vm4 = vcmp.ge.s32.totalorder %v1074_v16, %v1119_v14  ;;  %v1081_v22 = vand.u32 15, %v1067_v17 }
 0x294   :  { %vm2556_vm5 = vcmp.ge.s32.totalorder %v1095_v19, %v1119_v14  ;;  %vm2563_vm6 = vcmp.ge.s32.totalorder %v1081_v22, %v1119_v14 }
 0x295   :  { %2098 = vmatmul.mubr.msk.bf16.vlgmr.msra.gmra.mxu1 %vm948_vm2, %v943_v6 }
 0x296   :  { %2102 = vmatpush3.bf16.xpose.msra.mxu1 %v1014_v10  ;;  %2103 = vmatprep.mubr.msk.bf16.mxu1 %vm948_vm2, %v944_v9 }
 0x29d   :  { %2104 = vmatmul.mubr.msk.bf16.vlgmr.msra.gmra.mxu1 %vm948_vm2, %v945_v2 }
 0x355   :  { %v2099_v20 = vpop.f32.mrf.mxu1 }
 0x356   :  { %v1134_v33 = vsel %vm2545_vm3, %v2099_v20, -1e+30 }
 0x357   :  { %v992_v23 = vpop.f32.mrf.mxu1  ;;  %v1146_v24 = vsel %vm948_vm2, %v1134_v33, -inf }
 0x358   :  { %v1132_v37 = vsel %vm2549_vm4, %v992_v23, -1e+30  ;;  %1147 = vmax.xlane.f32.xlu0 %v1146_v24 }
 0x359   :  { %v2100_v32 = vpop.f32.mrf.mxu1  ;;  %v1140_v34 = vsel %vm948_vm2, %v1132_v37, -inf }
 0x35a   :  { %v1135_v36 = vsel %vm2556_vm5, %v2100_v32, -1e+30  ;;  %1141 = vmax.xlane.f32.xlu1 %v1140_v34 }
 0x35b   :  { %v995_v38 = vpop.f32.mrf.mxu1  ;;  %v1149_v42 = vsel %vm948_vm2, %v1135_v36, -inf }
 0x35c   :  { %v1133_v39 = vsel %vm2563_vm6, %v995_v38, -1e+30 }
 0x35d   :  { %v2105_v40 = vpop.f32.mrf.mxu1  ;;  %v1143_v26 = vsel %vm948_vm2, %v1133_v39, -inf }
 0x35e   :  { %v1138_v28 = vsel %vm2545_vm3, %v2105_v40, -1e+30  ;;  %1150 = vmax.xlane.f32.xlu1 %v1149_v42  ;;  %1144 = vmax.xlane.f32.xlu0 %v1143_v26 }
 0x35f   :  { %v1050_v43 = vpop.f32.mrf.mxu1  ;;  %v1158_v46 = vsel %vm948_vm2, %v1138_v28, -inf }
 0x360   :  { %v1136_v47 = vsel %vm2549_vm4, %v1050_v43, -1e+30 }
 0x361   :  { %v2106_v45 = vpop.f32.mrf.mxu1  ;;  %v1152_v53 = vsel %vm948_vm2, %v1136_v47, -inf }
 0x362   :  { %v1139_v48 = vsel %vm2556_vm5, %v2106_v45, -1e+30  ;;  %1159 = vmax.xlane.f32.xlu0 %v1158_v46 }
 0x363   :  { %v1053_v50 = vpop.f32.mrf.mxu1  ;;  %v1161_v51 = vsel %vm948_vm2, %v1139_v48, -inf }
 0x364   :  { %v1137_v52 = vsel %vm2563_vm6, %v1053_v50, -1e+30  ;;  %1162 = vmax.xlane.f32.xlu1 %v1161_v51 }
 0x365   :  { %v1155_v44 = vsel %vm948_vm2, %v1137_v52, -inf }
 0x366   :  { %1153 = vmax.xlane.f32.xlu0 %v1152_v53 }
 0x368   :  { %1156 = vmax.xlane.f32.xlu1 %v1155_v44 }
 0x379   :  { %700 = vrot.lane.b32.xlu1 %v2428_v27, %s2343_s24 }
 0x37c   :  { %698 = vrot.lane.b32.xlu0 %v2423_v25, %s2343_s24 }
 0x3e1   :  { %v1148_v54 = vpop.xlane.xlu0 %1147 }
 0x3e2   :  { %v1166_v55 = vsub.f32 %v1134_v33, %v1148_v54 }
 0x3e3   :  { %v1142_v56 = vpop.xlane.xlu1 %1141 }
 0x3e4   :  { %v1176_v57 = vmul.f32 1.442695, %v1166_v55  ;;  %v1164_v58 = vsub.f32 %v1132_v37, %v1142_v56 }
 0x3e6   :  { %2218 = vpow2.f32 %v1176_v57  ;;  %v1172_v59 = vmul.f32 1.442695, %v1164_v58 }
 0x3e7   :  { %v1151_v62 = vpop.xlane.xlu1 %1150  ;;  %v1145_v63 = vpop.xlane.xlu0 %1144 }
 0x3e8   :  { %v1167_v0 = vsub.f32 %v1135_v36, %v1151_v62  ;;  %v1165_v1 = vsub.f32 %v1133_v39, %v1145_v63  ;;  %2220 = vpow2.f32 %v1172_v59 }
 0x3ea   :  { %v1178_v60 = vmul.f32 1.442695, %v1167_v0  ;;  %v1174_v3 = vmul.f32 1.442695, %v1165_v1 }
 0x3eb   :  { %v1160_v4 = vpop.xlane.xlu0 %1159 }
 0x3ec   :  { %2222 = vpow2.f32 %v1178_v60  ;;  %v1170_v27 = vsub.f32 %v1138_v28, %v1160_v4 }
 0x3ed   :  { %v1163_v5 = vpop.xlane.xlu1 %1162  ;;  %2224 = vpow2.f32 %v1174_v3 }
 0x3ee   :  { %v1184_v25 = vmul.f32 1.442695, %v1170_v27  ;;  %v1171_v6 = vsub.f32 %v1139_v48, %v1163_v5 }
 0x3ef   :  { %v1154_v8 = vpop.xlane.xlu0 %1153 }
 0x3f0   :  { %2226 = vpow2.f32 %v1184_v25  ;;  %v1186_v9 = vmul.f32 1.442695, %v1171_v6  ;;  %v1168_v10 = vsub.f32 %v1136_v47, %v1154_v8 }
 0x3f1   :  { %v1157_v11 = vpop.xlane.xlu1 %1156 }
 0x3f2   :  { %2228 = vpow2.f32 %v1186_v9  ;;  %v1180_v61 = vmul.f32 1.442695, %v1168_v10  ;;  %v1169_v2 = vsub.f32 %v1137_v52, %v1157_v11 }
 0x3f3   :  { %v2589_v12 = vpop.eup %2218  ;;  %v699_v34 = vpop.permute.xlu0 %698 }
 0x3f4   :  { %2230 = vpow2.f32 %v1180_v61  ;;  %v1182_v13 = vmul.f32 1.442695, %v1169_v2  ;;  %v1194_v14 = vsel %vm948_vm2, %v2589_v12, 0.0  ;;  %v710_v48 = vcombine.high %v699_v34, %v2336_v7 }
 0x3f5   :  { %v2593_v15 = vpop.eup %2220  ;;  %1195 = vadd.xlane.f32.xlu0 %v1194_v14  ;;  %v701_v36 = vpop.permute.xlu1 %700  ;;  %v717_v44 = vrot.slane %v699_v34, %v2449_v41 }
 0x3f6   :  { %2232 = vpow2.f32 %v1182_v13  ;;  %v1188_v17 = vsel %vm948_vm2, %v2593_v15, 0.0  ;;  %v776_v43 = vcombine.high %v701_v36, %v2336_v7  ;;  %v724_v62 = vrot.slane %v710_v48, %v2449_v41 }
 0x3f8   :  { %v790_v50 = vrot.slane %v776_v43, %v2449_v41 }
 0x3f9   :  { %v2595_v16 = vpop.eup %2222  ;;  %1189 = vadd.xlane.f32.xlu0 %v1188_v17 }
 0x3fa   :  { %v1197_v18 = vsel %vm948_vm2, %v2595_v16, 0.0  ;;  %v2601_v19 = vpop.eup %2224 }
 0x3fb   :  { %1198 = vadd.xlane.f32.xlu1 %v1197_v18  ;;  %v1191_v22 = vsel %vm948_vm2, %v2601_v19, 0.0 }
 0x3fd   :  { %v2603_v20 = vpop.eup %2226 }
 0x3fe   :  { %v1206_v21 = vsel %vm948_vm2, %v2603_v20, 0.0 }
 0x3ff   :  { %v2609_v33 = vpop.eup %2228  ;;  %1207 = vadd.xlane.f32.xlu0 %v1206_v21  ;;  %1192 = vadd.xlane.f32.xlu1 %v1191_v22 }
 0x400   :  { %v1209_v31 = vsel %vm948_vm2, %v2609_v33, 0.0 }
 0x401   :  { %v2611_v23 = vpop.eup %2230 }
 0x402   :  { %v1200_v24 = vsel %vm948_vm2, %v2611_v23, 0.0 }
 0x403   :  { %v2617_v37 = vpop.eup %2232  ;;  %1201 = vadd.xlane.f32.xlu0 %v1200_v24  ;;  %1210 = vadd.xlane.f32.xlu1 %v1209_v31 }
 0x404   :  { %v1203_v32 = vsel %vm948_vm2, %v2617_v37, 0.0 }
 0x407   :  { %1204 = vadd.xlane.f32.xlu1 %v1203_v32 }
 0x418   :  { %702 = vrot.lane.b32.xlu1 %v2435_v29, %s2343_s24  ;;  %v783_v29 = vrot.slane %v701_v36, %v2449_v41 }
 0x419   :  { %704 = vrot.lane.b32.xlu0 %v2439_v30, %s2343_s24 }
 0x47e   :  { %v1196_v35 = vpop.xlane.xlu0 %1195 }
 0x482   :  { %v1190_v38 = vpop.xlane.xlu0 %1189 }
 0x483   :  { %2234 = vrcp.f32 %v1190_v38 }
 0x484   :  { %v1199_v39 = vpop.xlane.xlu1 %1198 }
 0x488   :  { %v1208_v40 = vpop.xlane.xlu0 %1207  ;;  %v1193_v42 = vpop.xlane.xlu1 %1192 }
 0x489   :  { %2236 = vrcp.f32 %v1193_v42 }
 0x48c   :  { %v1202_v26 = vpop.xlane.xlu0 %1201  ;;  %v1211_v28 = vpop.xlane.xlu1 %1210 }
 0x48d   :  { %2238 = vrcp.f32 %v1202_v26 }
 0x490   :  { %v705_v45 = vpop.permute.xlu0 %704  ;;  %v1205_v46 = vpop.xlane.xlu1 %1204 }
 0x491   :  { %v791_v30 = vcombine.high %v705_v45, %v2336_v7  ;;  %v798_v47 = vrot.slane %v705_v45, %v2449_v41  ;;  %2240 = vrcp.f32 %v1205_v46  ;;  %v2235_v59 = vpop.eup %2234 }
 0x492   :  { %2242 = vrcp.f32 %v1196_v35  ;;  %v1220_v11 = vmul.f32 %v2235_v59, %v2593_v15 }
 0x493   :  { %2244 = vrcp.f32 %v1199_v39  ;;  %v805_v51 = vrot.slane %v791_v30, %v2449_v41  ;;  %v806_v52 = vcombine.low %v783_v29, %v798_v47  ;;  %v807_v53 = vcombine.high %v783_v29, %v798_v47 }
 0x494   :  { %2246 = vrcp.f32 %v1208_v40  ;;  %v703_v54 = vpop.permute.xlu1 %702 }
 0x495   :  { %v814_v55 = vrot.slane %v806_v52, %v2456_v49  ;;  %v821_v56 = vrot.slane %v807_v53, %v2456_v49  ;;  %v822_v57 = vcombine.low %v790_v50, %v805_v51  ;;  %v823_v58 = vcombine.high %v790_v50, %v805_v51 }
 0x496   :  { %2248 = vrcp.f32 %v1211_v28  ;;  %v725_v63 = vcombine.high %v703_v54, %v2336_v7  ;;  %v732_v0 = vrot.slane %v703_v54, %v2449_v41  ;;  %v2237_v1 = vpop.eup %2236 }
 0x497   :  { %v830_v60 = vrot.slane %v822_v57, %v2456_v49  ;;  %v837_v3 = vrot.slane %v823_v58, %v2456_v49  ;;  %v892_v4 = vcombine.low %v814_v55, %v821_v56  ;;  %v2013_v27 = vcombine.high %v814_v55, %v821_v56 }
 0x498   :  { %v739_v5 = vrot.slane %v725_v63, %v2449_v41  ;;  %v740_v25 = vcombine.low %v717_v44, %v732_v0  ;;  %v741_v6 = vcombine.high %v717_v44, %v732_v0  ;;  %v1221_v8 = vmul.f32 %v2237_v1, %v2601_v19 }
 0x499   :  { %v908_v9 = vcombine.low %v830_v60, %v837_v3  ;;  %v2014_v10 = vcombine.high %v830_v60, %v837_v3  ;;  %v899_v61 = vrot.slane %v892_v4, %v2449_v41  ;;  %v907_v21 = vrot.slane %v2013_v27, %v2449_v41 }
 0x49a   :  { %v748_v2 = vrot.slane %v740_v25, %v2456_v49  ;;  %v755_v13 = vrot.slane %v741_v6, %v2456_v49  ;;  %v756_v14 = vcombine.low %v724_v62, %v739_v5  ;;  %v757_v17 = vcombine.high %v724_v62, %v739_v5  ;;  %v2239_v19 = vpop.eup %2238 }
 0x49b   :  { %v1228_v18 = vpack.c.bf16 %v1221_v8, %v1220_v11  ;;  %v915_v22 = vrot.slane %v908_v9, %v2449_v41  ;;  %v923_v24 = vrot.slane %v2014_v10, %v2449_v41  ;;  %v1224_v28 = vmul.f32 %v2239_v19, %v2611_v23 }
 0x49c   :  { %v764_v31 = vrot.slane %v756_v14, %v2456_v49  ;;  %v771_v15 = vrot.slane %v757_v17, %v2456_v49  ;;  %v842_v32 = vcombine.low %v748_v2, %v755_v13  ;;  %v2011_v34 = vcombine.high %v748_v2, %v755_v13 }
 0x49d   :  { %2109 = vmatprep.mubr.msk.bf16.mxu0 %vm948_vm2, %v1228_v18  ;;  %v932_v35 = vcombine.low %v915_v22, %v923_v24  ;;  %v924_v47 = vcombine.low %v899_v61, %v907_v21 }
 0x49e   :  { %v2241_v36 = vpop.eup %2240  ;;  %v858_v38 = vcombine.low %v764_v31, %v771_v15  ;;  %v2012_v39 = vcombine.high %v764_v31, %v771_v15  ;;  %v849_v40 = vrot.slane %v842_v32, %v2449_v41  ;;  %v857_v42 = vrot.slane %v2011_v34, %v2449_v41 }
 0x49f   :  { %v2243_v26 = vpop.eup %2242  ;;  %v1225_v43 = vmul.f32 %v2241_v36, %v2617_v37  ;;  %v939_v52 = vrot.slane %v932_v35, %v2456_v49  ;;  %v931_v37 = vrot.slane %v924_v47, %v2456_v49 }
 0x4a0   :  { %v2245_v45 = vpop.eup %2244  ;;  %v865_v46 = vrot.slane %v858_v38, %v2449_v41  ;;  %v873_v29 = vrot.slane %v2012_v39, %v2449_v41  ;;  %v874_v30 = vcombine.low %v849_v40, %v857_v42  ;;  %v1222_v0 = vmul.f32 %v2243_v26, %v2589_v12 }
 0x4a1   :  { %v2247_v48 = vpop.eup %2246  ;;  %v1230_v50 = vpack.c.bf16 %v1225_v43, %v1224_v28  ;;  %v940_v55 = vcombine.low %v931_v37, %v939_v52  ;;  %v941_v57 = vcombine.high %v931_v37, %v939_v52  ;;  %v1223_v62 = vmul.f32 %v2245_v45, %v2595_v16  ;;  %v2190_v16 = vld [vmem:[#allocation5 + $0x18] sm:$0xff]  }
 0x4a2   :  { %v882_v51 = vcombine.low %v865_v46, %v873_v29  ;;  %v881_v44 = vrot.slane %v874_v30, %v2456_v49  ;;  %v1226_v1 = vmul.f32 %v2247_v48, %v2603_v20 }
 0x4a3   :  { %v2249_v53 = vpop.eup %2248  ;;  %2115 = vmatprep.mubr.msk.bf16.mxu1 %vm948_vm2, %v1230_v50  ;;  %v1229_v60 = vpack.c.bf16 %v1223_v62, %v1222_v0 }
 0x4a4   :  { %v889_v23 = vrot.slane %v882_v51, %v2456_v49  ;;  %v1227_v63 = vmul.f32 %v2249_v53, %v2609_v33  ;;  %v2191_v33 = vld [vmem:[#allocation5 + $0x10] sm:$0xff]  }
 0x4a6   :  { %v890_v54 = vcombine.low %v881_v44, %v889_v23  ;;  %v891_v56 = vcombine.high %v881_v44, %v889_v23  ;;  %v1231_v3 = vpack.c.bf16 %v1227_v63, %v1226_v1 }
 0x4a8   :  { %v1232_v58 = vpack.c.bf16 %v940_v55, %v890_v54  ;;  %v1233_v59 = vpack.c.bf16 %v941_v57, %v891_v56 }
 0x4aa   :  { %2107 = vmatprep.subr.bf16.mxu0 %v1232_v58  ;;  %2113 = vmatprep.subr.bf16.mxu1 %v1233_v59 }
 0x4ab   :  { %2108 = vmatpush3.bf16.msra.mxu0 %v1232_v58  ;;  %2114 = vmatpush3.bf16.msra.mxu1 %v1233_v59 }
 0x4ac   :  { %2119 = vmatprep.subr.bf16.mxu0 %v2336_v7 }
 0x4ae   :  { %2110 = vmatmul.mubr.msk.bf16.vlgmr.msra.gmra.mxu0 %vm948_vm2, %v1229_v60  ;;  %2116 = vmatmul.mubr.msk.bf16.vlgmr.msra.gmra.mxu1 %vm948_vm2, %v1231_v3  ;;  %v2192_v3 = vld [vmem:[#allocation5 + $0x8] sm:$0xff]  }
 0x4af   :  { %2127 = vmatprep.mubr.msk.bf16.mxu0 %vm2337_vm1, %v2336_v7  ;;  %2120 = vmatpush3.bf16.msra.mxu0 %v2190_v16 }
 0x4b0   :  { %2121 = vmatprep.subr.bf16.mxu0 %v2336_v7 }
 0x4b3   :  { %2122 = vmatpush3.bf16.msra.mxu0 %v2191_v33 }
 0x4b4   :  { %2123 = vmatprep.subr.bf16.mxu0 %v2336_v7 }
 0x4b7   :  { %2124 = vmatpush3.bf16.msra.mxu0 %v2192_v3  ;;  %v2203_v3 = vld [vmem:[%s2790_s5] ss:$8 sps:$4 sm:$0xff]  }
 0x4b8   :  { %2125 = vmatprep.subr.bf16.mxu0 %v2336_v7 }
 0x56e   :  { %v2111_v12 = vpop.f32.mrf.mxu0  ;;  %v2117_v20 = vpop.f32.mrf.mxu1 }
 0x56f   :  { %v1360_v4 = vcombine.low %v2111_v12, %v2117_v20  ;;  %v1361_v27 = vcombine.high %v2111_v12, %v2117_v20 }
 0x570   :  { %v1274_v5 = vpop.f32.mrf.mxu0  ;;  %v1329_v25 = vpop.f32.mrf.mxu1 }
 0x571   :  { %v1344_v6 = vcombine.low %v1274_v5, %v1329_v25  ;;  %v1345_v8 = vcombine.high %v1274_v5, %v1329_v25  ;;  %v1368_v11 = vrot.slane %v1360_v4, %v2449_v41  ;;  %v1375_v61 = vrot.slane %v1361_v27, %v2449_v41 }
 0x572   :  { %v2112_v9 = vpop.f32.mrf.mxu0  ;;  %v2118_v10 = vpop.f32.mrf.mxu1 }
 0x573   :  { %v1352_v2 = vrot.slane %v1344_v6, %v2449_v41  ;;  %v1359_v13 = vrot.slane %v1345_v8, %v2449_v41  ;;  %v1428_v14 = vcombine.low %v2112_v9, %v2118_v10  ;;  %v1429_v17 = vcombine.high %v2112_v9, %v2118_v10 }
 0x574   :  { %v1277_v18 = vpop.f32.mrf.mxu0  ;;  %v1332_v21 = vpop.f32.mrf.mxu1 }
 0x575   :  { %v1376_v22 = vcombine.low %v1352_v2, %v1368_v11  ;;  %v1377_v24 = vcombine.high %v1352_v2, %v1368_v11  ;;  %v1392_v19 = vcombine.low %v1359_v13, %v1375_v61  ;;  %v1393_v31 = vcombine.high %v1359_v13, %v1375_v61  ;;  %v2193_v2 = vld [vmem:[#allocation5] sm:$0xff]  }
 0x576   :  { %v1412_v15 = vcombine.low %v1277_v18, %v1332_v21  ;;  %v1413_v32 = vcombine.high %v1277_v18, %v1332_v21  ;;  %v1436_v39 = vrot.slane %v1428_v14, %v2449_v41  ;;  %v1443_v40 = vrot.slane %v1429_v17, %v2449_v41  ;;  %2126 = vmatpush3.bf16.msra.mxu0 %v2193_v2  ;;  %v2207_v2 = vld [vmem:[%s2791_s6 + $0x30] sm:$0xff]  }
 0x577   :  { %v1384_v34 = vrot.slane %v1376_v22, %v2456_v49  ;;  %v1391_v35 = vrot.slane %v1377_v24, %v2456_v49  ;;  %v1400_v36 = vrot.slane %v1392_v19, %v2456_v49  ;;  %v1407_v38 = vrot.slane %v1393_v31, %v2456_v49  ;;  %2131 = vmatprep.subr.bf16.mxu0 %v2336_v7 }
 0x578   :  { %v1420_v42 = vrot.slane %v1412_v15, %v2449_v41  ;;  %v1427_v26 = vrot.slane %v1413_v32, %v2449_v41 }
 0x579   :  { %v1480_v28 = vcombine.low %v1384_v34, %v1391_v35  ;;  %v2023_v43 = vcombine.high %v1384_v34, %v1391_v35  ;;  %v1496_v45 = vcombine.low %v1400_v36, %v1407_v38  ;;  %v2024_v46 = vcombine.high %v1400_v36, %v1407_v38 }
 0x57a   :  { %v1444_v29 = vcombine.low %v1420_v42, %v1436_v39  ;;  %v1445_v30 = vcombine.high %v1420_v42, %v1436_v39  ;;  %v1460_v47 = vcombine.low %v1427_v26, %v1443_v40  ;;  %v1461_v48 = vcombine.high %v1427_v26, %v1443_v40 }
 0x57b   :  { %v1487_v50 = vrot.slane %v1480_v28, %v2449_v41  ;;  %v1495_v51 = vrot.slane %v2023_v43, %v2449_v41  ;;  %v1503_v52 = vrot.slane %v1496_v45, %v2449_v41  ;;  %v1511_v53 = vrot.slane %v2024_v46, %v2449_v41 }
 0x57c   :  { %v1452_v44 = vrot.slane %v1444_v29, %v2456_v49  ;;  %v1459_v23 = vrot.slane %v1445_v30, %v2456_v49  ;;  %v1468_v37 = vrot.slane %v1460_v47, %v2456_v49  ;;  %v1475_v54 = vrot.slane %v1461_v48, %v2456_v49  ;;  %v2262_v48 = vld [vmem:[#allocation2] sm:$0xff] }
 0x57d   :  { %v1513_v55 = vcombine.high %v1487_v50, %v1495_v51  ;;  %v1529_v56 = vcombine.high %v1503_v52, %v1511_v53  ;;  %v1512_v57 = vcombine.low %v1487_v50, %v1495_v51  ;;  %v1528_v58 = vcombine.low %v1503_v52, %v1511_v53 }
 0x57e   :  { %v1548_v59 = vcombine.low %v1452_v44, %v1459_v23  ;;  %v2025_v62 = vcombine.high %v1452_v44, %v1459_v23  ;;  %v1564_v63 = vcombine.low %v1468_v37, %v1475_v54  ;;  %v2026_v0 = vcombine.high %v1468_v37, %v1475_v54  ;;  %v2263_v44 = vld [vmem:[#allocation2 + $0x8] sm:$0xff] }
 0x57f   :  { %v1520_v1 = vrot.slane %v1512_v57, %v2456_v49  ;;  %v1536_v60 = vrot.slane %v1528_v58, %v2456_v49  ;;  %v1527_v4 = vrot.slane %v1513_v55, %v2456_v49  ;;  %v1543_v27 = vrot.slane %v1529_v56, %v2456_v49  ;;  %v2196_v57 = vld [vmem:[%s2790_s5 + $0x34] ss:$8 sps:$4 sm:$0xff]   ;;  %v2194_v58 = vld [vmem:[%s2790_s5 + $0x30] ss:$8 sps:$4 sm:$0xff]  }
 0x580   :  { %v1555_v16 = vrot.slane %v1548_v59, %v2449_v41  ;;  %v1563_v33 = vrot.slane %v2025_v62, %v2449_v41  ;;  %v1571_v12 = vrot.slane %v1564_v63, %v2449_v41  ;;  %v1579_v20 = vrot.slane %v2026_v0, %v2449_v41  ;;  %1810 = vmatprep.subr.bf16.mxu1 %v2196_v57  ;;  %v2199_v59 = vld [vmem:[%s2790_s5 + $0x24] ss:$8 sps:$4 sm:$0xff]   ;;  %v2197_v62 = vld [vmem:[%s2790_s5 + $0x20] ss:$8 sps:$4 sm:$0xff]   ;;  %v2200_v63 = vld [vmem:[%s2790_s5 + $0x10] ss:$8 sps:$4 sm:$0xff]  }
 0x581   :  { %v1544_v5 = vcombine.low %v1520_v1, %v1536_v60  ;;  %v1546_v13 = vcombine.low %v1527_v4, %v1543_v27  ;;  %v1545_v17 = vcombine.high %v1520_v1, %v1536_v60  ;;  %v1547_v31 = vcombine.high %v1527_v4, %v1543_v27  ;;  %1811 = vmatpush1.bf16.msra.mxu1 %v2194_v58  ;;  %v2202_v0 = vld [vmem:[%s2790_s5 + $0x14] ss:$8 sps:$4 sm:$0xff]   ;;  %v2205_v1 = vld [vmem:[%s2790_s5 + $0x4] ss:$8 sps:$4 sm:$0xff]  }
 0x582   :  { %v1581_v25 = vcombine.high %v1555_v16, %v1563_v33  ;;  %v1597_v6 = vcombine.high %v1571_v12, %v1579_v20  ;;  %v1580_v8 = vcombine.low %v1555_v16, %v1563_v33  ;;  %v1596_v9 = vcombine.low %v1571_v12, %v1579_v20  ;;  %1812 = vmatprep.subr.bf16.mxu1 %v2199_v59 }
 0x583   :  { %v2346_v60 = vmov 0  }
 0x584   :  { %v1595_v10 = vrot.slane %v1581_v25, %v2456_v49  ;;  %v1611_v11 = vrot.slane %v1597_v6, %v2456_v49  ;;  %v1588_v61 = vrot.slane %v1580_v8, %v2456_v49  ;;  %v1604_v41 = vrot.slane %v1596_v9, %v2456_v49  ;;  %1834 = vmatprep.mubr.bf16.mxu1 %v2346_v60  ;;  %v2032_v8 = vld [vmem:[%s2789_s4] ss:$0 sm:$0xff] }
 0x585   :  { %1813 = vmatpush1.bf16.msra.mxu1 %v2197_v62 }
 0x586   :  { %v1614_v14 = vcombine.low %v1595_v10, %v1611_v11  ;;  %v1613_v18 = vcombine.high %v1588_v61, %v1604_v41  ;;  %v1612_v21 = vcombine.low %v1588_v61, %v1604_v41  ;;  %v1615_v19 = vcombine.high %v1595_v10, %v1611_v11  ;;  %1814 = vmatprep.subr.bf16.mxu1 %v2202_v0  ;;  %v2206_v41 = vld [vmem:[%s2791_s6 + $0x38] sm:$0xff]  }
 0x588   :  { %v2176_v22 = vpack.i.bf16 %v1614_v14, %v1546_v13  ;;  %v2171_v24 = vpack.i.bf16 %v1613_v18, %v1545_v17  ;;  %v2181_v15 = vpack.i.bf16 %v1615_v19, %v1547_v31  ;;  %v2208_v13 = vld [vmem:[%s2791_s6 + $0x28] sm:$0xff]   ;;  %v2209_v14 = vld [vmem:[%s2791_s6 + $0x20] sm:$0xff]   ;;  %v2210_v17 = vld [vmem:[%s2791_s6 + $0x18] sm:$0xff]  }
 0x589   :  { %1815 = vmatpush1.bf16.msra.mxu1 %v2200_v63  ;;  %v2211_v18 = vld [vmem:[%s2791_s6 + $0x10] sm:$0xff]  }
 0x58a   :  { %2177 = vrot.lane.b32.xlu0 %v2176_v22, %s2343_s24  ;;  %2172 = vrot.lane.b32.xlu1 %v2171_v24, %s2344_s25  ;;  %v2213_v22 = vld [vmem:[%s2791_s6] sm:$0xff]  }
 0x58b   :  { %1816 = vmatprep.subr.bf16.mxu1 %v2205_v1 }
 0x58d   :  { %1817 = vmatpush1.bf16.msra.mxu1 %v2203_v3 }
 0x58e   :  { %2182 = vrot.lane.b32.xlu1 %v2181_v15, %s2345_s26 }
 0x5fc   :  { %v2178_v49 = vpop.permute.xlu0 %2177  ;;  %v2173_v32 = vpop.permute.xlu1 %2172 }
 0x5fd   :  { %v2175_v34 = vunpack.i.h.bf16 %v2173_v32  ;;  %v2174_v35 = vunpack.i.l.bf16 %v2173_v32  ;;  %v2180_v36 = vunpack.i.h.bf16 %v2178_v49  ;;  %v2179_v38 = vunpack.i.l.bf16 %v2178_v49 }
 0x5ff   :  { %v1640_v39 = vsel %vm948_vm2, %v1544_v5, %v2174_v35  ;;  %v1641_v40 = vsel %vm948_vm2, %v1612_v21, %v2175_v34  ;;  %v2212_v21 = vld [vmem:[%s2791_s6 + $0x8] sm:$0xff]   ;;  %s2347_s6 = smov [#allocation7]  }
 0x600   :  { %v2183_v42 = vpop.permute.xlu1 %2182  ;;  %v1643_v43 = vsel %vm1642_vm7, %v1640_v39, %v2179_v38  ;;  %v1644_v45 = vsel %vm1642_vm7, %v1641_v40, %v2180_v36  ;;  %s1984_s14 = sshll.u32 %s2347_s6, 4  ;;  %s1985_s14 = int_to_ptr.vmem [resolvable:$true] %s1984_s14 }
 0x601   :  { %v2185_v26 = vunpack.i.h.bf16 %v2183_v42  ;;  %v2184_v28 = vunpack.i.l.bf16 %v2183_v42  ;;  %p2309_p11 = scmp.lt.s32.totalorder %s1985_s14, %s1985_s14 }
 0x603   :  { %v1646_v46 = vsel %vm1645_vm8, %v1643_v43, %v2184_v28  ;;  %v1647_v29 = vsel %vm1645_vm8, %v1644_v45, %v2185_v26 }
 0x604   :  { %v1648_v30 = vpack.c.bf16 %v1647_v29, %v1646_v46 }
 0x606   :  { %2128 = vmatmul.mubr.msk.bf16.vlgmr.msra.gmra.mxu0 %vm61_vm0, %v1648_v30 }
 0x607   :  { %2147 = vmatprep.mubr.msk.bf16.mxu0 %vm2337_vm1, %v2336_v7  ;;  %2132 = vmatpush3.bf16.msra.mxu0 %v2206_v41 }
 0x608   :  { %2133 = vmatprep.subr.bf16.mxu0 %v2336_v7 }
 0x60b   :  { %2134 = vmatpush3.bf16.msra.mxu0 %v2207_v2 }
 0x60c   :  { %2135 = vmatprep.subr.bf16.mxu0 %v2336_v7 }
 0x60f   :  { %2136 = vmatpush3.bf16.msra.mxu0 %v2208_v13 }
 0x610   :  { %2137 = vmatprep.subr.bf16.mxu0 %v2336_v7 }
 0x613   :  { %2138 = vmatpush3.bf16.msra.mxu0 %v2209_v14 }
 0x614   :  { %2139 = vmatprep.subr.bf16.mxu0 %v2336_v7 }
 0x617   :  { %2140 = vmatpush3.bf16.msra.mxu0 %v2210_v17 }
 0x618   :  { %2141 = vmatprep.subr.bf16.mxu0 %v2336_v7 }
 0x61b   :  { %2142 = vmatpush3.bf16.msra.mxu0 %v2211_v18 }
 0x61c   :  { %2143 = vmatprep.subr.bf16.mxu0 %v2336_v7 }
 0x61f   :  { %2144 = vmatpush3.bf16.msra.mxu0 %v2212_v21 }
 0x620   :  { %2145 = vmatprep.subr.bf16.mxu0 %v2336_v7 }
 0x623   :  { %2146 = vmatpush3.bf16.msra.mxu0 %v2213_v22 }
 0x6c6   :  { %v1718_v47 = vpop.f32.mrf.mxu0 }
 0x6c7   :  { %v1719_v50 = vadd.f32 %v2262_v48, %v1718_v47 }
 0x6c8   :  { %v2129_v51 = vpop.f32.mrf.mxu0 }
 0x6c9   :  { %v1726_v52 = vmul.f32 %v1719_v50, %v1719_v50 }
 0x6ca   :  { %v1721_v53 = vpop.f32.mrf.mxu0 }
 0x6cb   :  { %v1722_v23 = vadd.f32 %v2263_v44, %v1721_v53  ;;  %v1728_v37 = vsel %vm61_vm0, %v1726_v52, 0.0 }
 0x6cc   :  { %1729 = vadd.xlane.f32.xlu0 %v1728_v37  ;;  %v2130_v54 = vpop.f32.mrf.mxu0 }
 0x6cd   :  { %v1727_v55 = vmul.f32 %v1722_v23, %v1722_v23 }
 0x6cf   :  { %v1731_v56 = vsel %vm61_vm0, %v1727_v55, 0.0 }
 0x6d0   :  { %1732 = vadd.xlane.f32.xlu1 %v1731_v56 }
 0x6e1   :  { %1971 = vrot.lane.b32.xlu1 %v1722_v23, %s2334_s11 }
 0x6e2   :  { %1969 = vrot.lane.b32.xlu0 %v1719_v50, %s2334_s11  ;;  %s2304_s11 = scalar_lea.vmem %s1985_s14, 256 }
 0x6e3   :  { %p2305_p10 = scmp.ne.s32.totalorder %s1985_s14, %s2304_s11  ;;  %p2310_p12 = scmp.lt.s32.totalorder %s2304_s11, %s2304_s11 }
 0x6e5   :  { %p2311_p13 = por %p2310_p12, %p2309_p11 }
 0x6e7   :  { %p2312_p0 = pnand %p2311_p13, %p2305_p10 }
 0x755   :  { %v1730_v16 = vpop.xlane.xlu0 %1729 }
 0x756   :  { %v1734_v33 = vmul.f32 0.015625, %v1730_v16 }
 0x758   :  { %v1736_v12 = vadd.f32 1e-06, %v1734_v33 }
 0x759   :  { %v1733_v20 = vpop.xlane.xlu1 %1732  ;;  %v1970_v45 = vpop.permute.xlu0 %1969 }
 0x75a   :  { %2250 = vrsqrt.f32 %v1736_v12  ;;  %v1735_v4 = vmul.f32 0.015625, %v1733_v20 }
 0x75c   :  { %v1737_v27 = vadd.f32 1e-06, %v1735_v4 }
 0x75d   :  { %v1972_v47 = vpop.permute.xlu1 %1971 }
 0x75e   :  { %2252 = vrsqrt.f32 %v1737_v27 }
 0x767   :  { %v2251_v5 = vpop.eup %2250 }
 0x768   :  { %v1740_v25 = vmul.f32 %v2251_v5, %v1719_v50 }
 0x76a   :  { %v1748_v10 = vmul.f32 %v2032_v8, %v1740_v25 }
 0x76b   :  { %v2253_v6 = vpop.eup %2252 }
 0x76c   :  { %v1741_v9 = vmul.f32 %v2253_v6, %v1722_v23 }
 0x76e   :  { %v1749_v11 = vmul.f32 %v2032_v8, %v1741_v9 }
 0x770   :  { %v1750_v61 = vpack.c.bf16 %v1749_v11, %v1748_v10 }
 0x772   :  { %2041 = vmatmul.mubr.msk.bf16.vlgmr.msra.gmra.mxu1 %vm61_vm0, %v1750_v61 }
 0x832   :  { %v1836_v24 = vpop.f32.mrf.mxu1 }
 0x833   :  { %v2042_v19 = vmul.f32 -1.442695, %v1836_v24 }
 0x834   :  { %v1838_v31 = vpop.f32.mrf.mxu1 }
 0x835   :  { %2254 = vpow2.f32 %v2042_v19 }
 0x836   :  { %v1840_v15 = vpop.f32.mrf.mxu1 }
 0x837   :  { %v2043_v49 = vmul.f32 -1.442695, %v1840_v15 }
 0x838   :  { %v1842_v42 = vpop.f32.mrf.mxu1 }
 0x839   :  { %2256 = vpow2.f32 %v2043_v49 }
 0x842   :  { %v2255_v32 = vpop.eup %2254 }
 0x843   :  { %v1851_v34 = vadd.f32 1.0, %v2255_v32 }
 0x845   :  { %2258 = vrcp.f32 %v1851_v34 }
 0x846   :  { %v2257_v35 = vpop.eup %2256 }
 0x847   :  { %v1852_v36 = vadd.f32 1.0, %v2257_v35 }
 0x849   :  { %2260 = vrcp.f32 %v1852_v36 }
 0x852   :  { %v2259_v38 = vpop.eup %2258 }
 0x853   :  { %v1857_v7 = vmul.f32 %v2259_v38, %v1836_v24 }
 0x855   :  { %v1859_v26 = vmul.f32 %v1857_v7, %v1838_v31 }
 0x856   :  { %v2261_v39 = vpop.eup %2260 }
 0x857   :  { %v1858_v40 = vmul.f32 %v2261_v39, %v1840_v15 }
 0x859   :  { %v1860_v28 = vmul.f32 %v1858_v40, %v1842_v42 }
 0x85b   :  { %v1861_v43 = vpack.c.bf16 %v1860_v28, %v1859_v26 }
 0x85d   :  { %2148 = vmatmul.mubr.bf16.vlgmr.msra.gmra.mxu0 %v1861_v43 }
 0x91d   :  { %v1960_v46 = vpop.f32.mrf.mxu0 }
 0x91e   :  { %v1975_v29 = vsel %vm61_vm0, %v1960_v46, %v1970_v45 }
 0x91f   :  { %1977 = vst [vmem:[#allocation7] sm:$0xff] %v1975_v29  ;;  %v2149_v30 = vpop.f32.mrf.mxu0 }
 0x921   :  { %v1963_v48 = vpop.f32.mrf.mxu0 }
 0x922   :  { %v1976_v50 = vsel %vm61_vm0, %v1963_v48, %v1972_v47 }
 0x923   :  { %1978 = vst [vmem:[#allocation7 + $0x8] sm:$0xff] %v1976_v50  ;;  %v2150_v51 = vpop.f32.mrf.mxu0 }
 0x924   :  { %2315 = shalt.err (!%p2312_p0)
}
 0x925   :  { %1990 = dma.vmem_to_hbm [thread:$0]  %s1985_s14, 256, %s2792_s7, [#allocation4], %s2331_s27, %s2331_s27, %s2332_s28  }
 0x926   :  { %2328 = dma.done.wait [#allocation4], 256  }
 0x927   :  { %2329 = vsyncadd [#allocation4], 4294967040 }
 0x928   :  { %1994 = vsyncpa [#allocation3], 1 }
 0x929   :  { %1995 = vsyncpa [#allocation6], 1 }
 0x92a   :  { %1996 = vsyncpa [#allocation4], 1 }

</bundles_post_ra>
